<compile_context>
chip_gen: v7x
topology: tpu7x:2x2x1
jax: 0.10.0
libtpu: 0.0.40
codegen_flags: <defaults>
</compile_context>

<pallas_src>
import functools

import jax
import jax.numpy as jnp
from jax.experimental import pallas as pl
from jax.experimental.pallas import tpu as pltpu


def _motion_kernel(kp_ref, trans_ref, *, inv_k: float):
    # kp_ref:    [2, 2, K, B] float32 in VMEM  -> (src/drv, xy, keypoint, batch)
    # trans_ref: [2, B]       float32 in VMEM  -> (xy, batch), batch on lanes
    diff = kp_ref[1] - kp_ref[0]                      # [2, K, B]
    # mean(drv) - mean(src) == mean(drv - src); reduce K (sublane axis) once.
    trans_ref[...] = jnp.sum(diff, axis=1) * inv_k    # [2, B]


@jax.jit
def motion_estimator(source_keypoints: jax.Array, driving_keypoints: jax.Array):
    """Pallas implementation of MotionEstimator.forward.

    Args:
        source_keypoints:  [B, K, 2] float32
        driving_keypoints: [B, K, 2] float32
    Returns:
        dict with 'translation' [B, 2], 'rotation' [B, 1], 'keypoints' [B, K, 2]
    """
    assert source_keypoints.shape == driving_keypoints.shape
    B, K, C = source_keypoints.shape
    assert C == 2

    src = source_keypoints.astype(jnp.float32)
    drv = driving_keypoints.astype(jnp.float32)

    # Single stacked input with batch on the lane (last) axis: [2, 2, K, B].
    stacked = jnp.stack([src, drv], axis=0).transpose(0, 3, 2, 1)

    trans_t = pl.pallas_call(
        functools.partial(_motion_kernel, inv_k=1.0 / K),
        out_shape=jax.ShapeDtypeStruct((C, B), jnp.float32),
        in_specs=[pl.BlockSpec(memory_space=pltpu.MemorySpace.VMEM)],
        out_specs=pl.BlockSpec(memory_space=pltpu.MemorySpace.VMEM),
    )(stacked)

    translation = trans_t.T                                # [B, 2]
    rotation = jnp.zeros((B, 1), dtype=jnp.float32)        # compile-time constant
    return {
        "translation": translation,
        "rotation": rotation,
        "keypoints": driving_keypoints,                    # passthrough, no compute
    }


if __name__ == "__main__":
    key = jax.random.PRNGKey(0)
    k1, k2 = jax.random.split(key)
    B, K = 2, 8  # batch=2, 8 keypoints, 2D coordinates
    source_kp = jax.random.normal(k1, (B, K, 2), dtype=jnp.float32)
    driving_kp = jax.random.normal(k2, (B, K, 2), dtype=jnp.float32)

    out = motion_estimator(source_kp, driving_kp)
    jax.block_until_ready(out)

    # Reference check against plain JAX (same semantics as the PyTorch module).
    ref_translation = driving_kp.mean(axis=1) - source_kp.mean(axis=1)
    assert out["translation"].shape == (B, 2)
    assert jnp.allclose(out["translation"], ref_translation, atol=1e-5)
    assert out["rotation"].shape == (B, 1) and jnp.all(out["rotation"] == 0.0)
    assert jnp.array_equal(out["keypoints"], driving_kp)

    print("KERNEL_OK")
</pallas_src>

<mosaic_0001>
module attributes {stable_mosaic.version = 11 : i64} {
  func.func @_motion_kernel(%arg0: memref<2x2x8x2xf32, #tpu.memory_space<vmem>>, %arg1: memref<2x2xf32, #tpu.memory_space<vmem>>) attributes {dimension_semantics = [], scalar_prefetch = 0 : i64, scratch_operands = 0 : i64, tpu.core_type = #tpu.core_type<tc>} {
    %c1 = arith.constant 1 : index
    %c0 = arith.constant 0 : index
    %c0_0 = arith.constant 0 : index
    %c0_1 = arith.constant 0 : index
    %0 = vector.load %arg0[%c1, %c0, %c0_0, %c0_1] : memref<2x2x8x2xf32, #tpu.memory_space<vmem>>, vector<1x2x8x2xf32>
    %1 = vector.shape_cast %0 : vector<1x2x8x2xf32> to vector<2x8x2xf32>
    %c0_2 = arith.constant 0 : index
    %c0_3 = arith.constant 0 : index
    %c0_4 = arith.constant 0 : index
    %c0_5 = arith.constant 0 : index
    %2 = vector.load %arg0[%c0_2, %c0_3, %c0_4, %c0_5] : memref<2x2x8x2xf32, #tpu.memory_space<vmem>>, vector<1x2x8x2xf32>
    %3 = vector.shape_cast %2 : vector<1x2x8x2xf32> to vector<2x8x2xf32>
    %4 = arith.subf %1, %3 : vector<2x8x2xf32>
    %cst = arith.constant dense<0.000000e+00> : vector<2x2xf32>
    %5 = vector.multi_reduction <add>, %4, %cst [1] : vector<2x8x2xf32> to vector<2x2xf32>
    %cst_6 = arith.constant 1.250000e-01 : f32
    %6 = vector.broadcast %cst_6 : f32 to vector<2x2xf32>
    %7 = arith.mulf %5, %6 : vector<2x2xf32>
    %c0_7 = arith.constant 0 : index
    %c0_8 = arith.constant 0 : index
    %8 = vector.load %arg1[%c0_7, %c0_8] : memref<2x2xf32, #tpu.memory_space<vmem>>, vector<2x2xf32>
    tpu.vector_store %arg1[%c0_7, %c0_8], %7 {strides = array<i32>} : memref<2x2xf32, #tpu.memory_space<vmem>>, vector<2x2xf32>,
    return
  }
}

</mosaic_0001>

<bundles_post_ra>
// kernel: motion_estimator.1
= control target key start
LH: loop header
LB: loop body
LE: loop exit
PB: predicated region body
PF: predicated region fallthrough
CT: control target
= control target key end

     0   :  { %vm15_vm0 = vcmask 15360   ;;  %vm34_vm1 = vcmask 1041409   ;;  %vm37_vm2 = vcmask 9216   ;;  %s70_s0 = inlined_call_operand.vmem [shape: f32[2,2,8,2], index: 0, kind: input, shape index: {}]   ;;  %s71_s1 = inlined_call_operand.vmem [shape: f32[2,2], index: 1, kind: output, shape index: {}]  }
   0x1   :  { %v43_v0 = vld [vmem:[%s70_s0 + $0x10] sm:$0xff]  ;;  %v44_v1 = vld [vmem:[%s70_s0 + $0x18] sm:$0xff]  ;;  %v11_v2 = vld [vmem:[%s70_s0] sm:$0xff] }
   0x2   :  { %v12_v3 = vld [vmem:[%s70_s0 + $0x8] sm:$0xff]  ;;  %v13_v4 = vsub.f32 %v43_v0, %v11_v2 }
   0x3   :  { %v14_v5 = vsub.f32 %v44_v1, %v12_v3 }
   0x4   :  { %v16_v6 = vsel %vm15_vm0, %v13_v4, 0.0 }
   0x5   :  { %v17_v7 = vrot.slane %v16_v6, 4  ;;  %v23_v8 = vsel %vm15_vm0, %v14_v5, 0.0 }
   0x6   :  { %v24_v9 = vrot.slane %v23_v8, 4 }
   0x7   :  { %v18_v10 = vadd.f32 %v17_v7, %v16_v6 }
   0x8   :  { %v25_v11 = vadd.f32 %v24_v9, %v23_v8 }
   0x9   :  { %v19_v12 = vrot.slane %v18_v10, 2 }
   0xa   :  { %v26_v13 = vrot.slane %v25_v11, 2 }
   0xb   :  { %v20_v14 = vadd.f32 %v19_v12, %v18_v10 }
   0xc   :  { %v27_v15 = vadd.f32 %v26_v13, %v25_v11 }
   0xd   :  { %v21_v16 = vrot.slane %v20_v14, 1 }
   0xe   :  { %v28_v17 = vrot.slane %v27_v15, 1 }
   0xf   :  { %v22_v18 = vadd.f32 %v21_v16, %v20_v14 }
  0x10   :  { %v29_v19 = vadd.f32 %v28_v17, %v27_v15 }
  0x11   :  { %v30_v20 = vmul.f32 0.125, %v22_v18 }
  0x12   :  { %v31_v21 = vmul.f32 0.125, %v29_v19 }
  0x14   :  { %v35_v22 = vsel %vm34_vm1, %v31_v21, %v30_v20 }
  0x15   :  { %38 = vst.msk [vmem:[%s71_s1] sm:$0x3] %vm37_vm2, %v35_v22 }

</bundles_post_ra>
